<compile_context>
chip_gen: v7x
topology: tpu7x:2x2x1
jax: 0.10.0
libtpu: 0.0.40
codegen_flags: <defaults>
</compile_context>

<pallas_src>
import jax
import jax.numpy as jnp
from jax.experimental import pallas as pl
from jax.experimental.pallas import tpu as pltpu


LANE = 128
SUBLANE = 8


def _round_up(x, m):
    return ((x + m - 1) // m) * m


def _choose_batch_tile(b8):
    # Fewer, fatter tiles amortize per-grid-step overhead; still guarantee >=2
    # tiles when the batch allows so both v7x TensorCores can be used.
    if b8 <= SUBLANE:
        return b8
    if b8 <= 1024:
        return _round_up((b8 + 1) // 2, SUBLANE)
    return 512


# -----------------------------------------------------------------------------
# Shared gate math (traced inside the kernels)
# -----------------------------------------------------------------------------
def _gru_cell_math(h, za, wl, bl, wgx, wgh, bgx, bgh):
    """h, za: f32 activations; wl/wgx/wgh: bf16 weights; biases f32. -> new h (f32)."""
    rp = h.shape[-1]
    bf16 = jnp.bfloat16

    # Linear(cat(z, a)) + ELU : one bf16 MXU call, f32 accumulate.
    pre = jnp.dot(za.astype(bf16), wl, preferred_element_type=jnp.float32) + bl
    # ELU(alpha=1); exp guarded so the untaken branch never produces inf.
    x = jnp.where(pre > 0, pre, jnp.exp(jnp.minimum(pre, 0.0)) - 1.0)

    # GRUCell: two independent bf16 dots accumulating in f32 (no concat scratch;
    # the h-side dot can fill the MXU while the VPU/EUP finish the ELU).
    gi = jnp.dot(x.astype(bf16), wgx, preferred_element_type=jnp.float32) + bgx
    gh = jnp.dot(h.astype(bf16), wgh, preferred_element_type=jnp.float32) + bgh

    # Lane-aligned gate slices: [ r | z | n ], each a full Rp (=k*128) block.
    r = jax.nn.sigmoid(gi[:, :rp] + gh[:, :rp])
    zg = jax.nn.sigmoid(gi[:, rp:2 * rp] + gh[:, rp:2 * rp])
    n = jnp.tanh(gi[:, 2 * rp:] + r * gh[:, 2 * rp:])   # r gates only the hidden part
    return (1.0 - zg) * n + zg * h


# -----------------------------------------------------------------------------
# Kernels
# -----------------------------------------------------------------------------
def recurrent_step_kernel(h_ref, za_ref, wl_ref, bl_ref, wgx_ref, wgh_ref,
                          bgx_ref, bgh_ref, out_ref):
    out_ref[...] = _gru_cell_math(
        h_ref[...], za_ref[...], wl_ref[...], bl_ref[...],
        wgx_ref[...], wgh_ref[...], bgx_ref[...], bgh_ref[...])


def recurrent_rollout_kernel(h0_ref, za_ref, wl_ref, bl_ref, wgx_ref, wgh_ref,
                             bgx_ref, bgh_ref, hseq_ref, h_vmem):
    # Time axis is the innermost ("arbitrary") grid axis; h is carried in VMEM.
    @pl.when(pl.program_id(1) == 0)
    def _():
        h_vmem[...] = h0_ref[...]

    h_new = _gru_cell_math(
        h_vmem[...], za_ref[...], wl_ref[...], bl_ref[...],
        wgx_ref[...], wgh_ref[...], bgx_ref[...], bgh_ref[...])
    h_vmem[...] = h_new
    hseq_ref[...] = h_new


# -----------------------------------------------------------------------------
# Parameter init (PyTorch-like) and packing into the padded / split layout
# -----------------------------------------------------------------------------
def init_params(key, latent_size, action_size, hidden_size, recurrent_size):
    L, A, H, R = latent_size, action_size, hidden_size, recurrent_size
    ks = jax.random.split(key, 7)
    lim_l = 1.0 / jnp.sqrt(jnp.float32(L + A))
    lim_g = 1.0 / jnp.sqrt(jnp.float32(R))

    def u(k, shape, lim):
        return jax.random.uniform(k, shape, jnp.float32, -lim, lim)

    return {
        # nn.Linear(L + A, H): weight stored transposed, split into z / a parts.
        "wl_z": u(ks[0], (L, H), lim_l),
        "wl_a": u(ks[1], (A, H), lim_l),
        "b_l":  u(ks[2], (H,), lim_l),
        # nn.GRUCell(H, R): weight_ih (3R,H)^T, weight_hh (3R,R)^T, gate order r|z|n.
        "w_ih": u(ks[3], (H, 3 * R), lim_g),
        "b_ih": u(ks[4], (3 * R,), lim_g),
        "w_hh": u(ks[5], (R, 3 * R), lim_g),
        "b_hh": u(ks[6], (3 * R,), lim_g),
    }


def pack_params(params, latent_size, action_size, hidden_size, recurrent_size):
    """Pad to lane multiples, fuse the Linear, split the GRU weight, bf16 MXU operands."""
    L, A, H, R = latent_size, action_size, hidden_size, recurrent_size
    Kp = _round_up(L + A, LANE)
    Hp = _round_up(H, LANE)
    Rp = _round_up(R, LANE)

    # Fused Linear weight: rows = [z-part ; a-part ; zero pad], cols padded.
    wl = jnp.zeros((Kp, Hp), jnp.float32)
    wl = wl.at[:L, :H].set(params["wl_z"])
    wl = wl.at[L:L + A, :H].set(params["wl_a"])
    bl = jnp.zeros((1, Hp), jnp.float32).at[0, :H].set(params["b_l"])

    # GRU weights: input side (Hp, 3*Rp) and hidden side (Rp, 3*Rp), gate lane
    # blocks [ r | z | n ]. No all-zero gate blocks (unlike the old 4*Rp layout).
    wgx = jnp.zeros((Hp, 3 * Rp), jnp.float32)
    wgh = jnp.zeros((Rp, 3 * Rp), jnp.float32)
    bgx = jnp.zeros((1, 3 * Rp), jnp.float32)
    bgh = jnp.zeros((1, 3 * Rp), jnp.float32)
    for g in range(3):
        wgx = wgx.at[:H, g * Rp:g * Rp + R].set(params["w_ih"][:, g * R:(g + 1) * R])
        wgh = wgh.at[:R, g * Rp:g * Rp + R].set(params["w_hh"][:, g * R:(g + 1) * R])
        bgx = bgx.at[0, g * Rp:g * Rp + R].set(params["b_ih"][g * R:(g + 1) * R])
        bgh = bgh.at[0, g * Rp:g * Rp + R].set(params["b_hh"][g * R:(g + 1) * R])

    return {
        "wl": wl.astype(jnp.bfloat16), "bl": bl,
        "wgx": wgx.astype(jnp.bfloat16), "wgh": wgh.astype(jnp.bfloat16),
        "bgx": bgx, "bgh": bgh,
        "dims": (L, A, H, R, Kp, Hp, Rp),
    }


# -----------------------------------------------------------------------------
# Spec / budget helpers
# -----------------------------------------------------------------------------
def _weight_bytes(packed):
    return sum(int(packed[k].size) * packed[k].dtype.itemsize
               for k in ("wl", "bl", "wgx", "wgh", "bgx", "bgh"))


def _weight_specs(Kp, Hp, Rp, n_grid_axes):
    # Constant-index, single-buffered: fetched once, VMEM-resident, 1x footprint.
    if n_grid_axes == 1:
        cmap = lambda i: (0, 0)
    else:
        cmap = lambda i, t: (0, 0)
    buf1 = pl.Buffered(1)
    return [
        pl.BlockSpec((Kp, Hp), cmap, pipeline_mode=buf1),          # wl
        pl.BlockSpec((1, Hp), cmap, pipeline_mode=buf1),           # bl
        pl.BlockSpec((Hp, 3 * Rp), cmap, pipeline_mode=buf1),      # wgx
        pl.BlockSpec((Rp, 3 * Rp), cmap, pipeline_mode=buf1),      # wgh
        pl.BlockSpec((1, 3 * Rp), cmap, pipeline_mode=buf1),       # bgx
        pl.BlockSpec((1, 3 * Rp), cmap, pipeline_mode=buf1),       # bgh
    ]


def _vmem_limit(weight_bytes, act_tile_bytes):
    needed = weight_bytes + 2 * act_tile_bytes + (4 << 20)
    # TODO(synk): on v7x (64 MiB VMEM) tile the gate columns instead of raising
    # this further once real-size weights no longer fit resident.
    return int(min(max(needed, 32 << 20), 96 << 20))


# -----------------------------------------------------------------------------
# Wrappers
# -----------------------------------------------------------------------------
def recurrent_model_forward(h, z, a, packed, donate_h=False):
    """Single step. h: (B, R), z: (B, L), a: (B, A) -> new h: (B, R) float32."""
    L, A, H, R, Kp, Hp, Rp = packed["dims"]
    B = h.shape[0]
    B8 = _round_up(B, SUBLANE)
    Bt = _choose_batch_tile(B8)
    Bp = _round_up(B8, Bt)

    # Only materialize padded copies when shapes are not already aligned.
    if Bp == B and Rp == R:
        h_in = h
    else:
        h_in = jnp.zeros((Bp, Rp), jnp.float32).at[:B, :R].set(h)
    if Bp == B and Kp == L + A:
        za = jnp.concatenate([z, a], axis=-1).astype(jnp.float32)
    else:
        za = (jnp.zeros((Bp, Kp), jnp.float32)
              .at[:B, :L].set(z).at[:B, L:L + A].set(a))

    weight_bytes = _weight_bytes(packed)
    act_tile_bytes = 4 * Bt * (Kp + 2 * Rp)
    cost = pl.CostEstimate(
        flops=int(2 * Bp * (Kp * Hp + Hp * 3 * Rp + Rp * 3 * Rp)),
        transcendentals=int(Bp * (Hp + 3 * Rp)),
        bytes_accessed=int(weight_bytes + 4 * Bp * (Kp + 2 * Rp)))

    out = pl.pallas_call(
        recurrent_step_kernel,
        out_shape=jax.ShapeDtypeStruct((Bp, Rp), jnp.float32),
        grid=(Bp // Bt,),
        in_specs=[
            pl.BlockSpec((Bt, Rp), lambda i: (i, 0)),   # h  (per batch tile)
            pl.BlockSpec((Bt, Kp), lambda i: (i, 0)),   # cat(z, a)
            *_weight_specs(Kp, Hp, Rp, 1),
        ],
        out_specs=pl.BlockSpec((Bt, Rp), lambda i: (i, 0)),
        # Only alias when the input is a wrapper temp (or the caller donates h).
        input_output_aliases=({0: 0} if (h_in is not h or donate_h) else {}),
        compiler_params=pltpu.CompilerParams(
            dimension_semantics=("parallel",),
            vmem_limit_bytes=_vmem_limit(weight_bytes, act_tile_bytes)),
        cost_estimate=cost,
    )(h_in, za, packed["wl"], packed["bl"], packed["wgx"], packed["wgh"],
      packed["bgx"], packed["bgh"])

    if Bp == B and Rp == R:
        return out
    return out[:B, :R]


def recurrent_model_rollout(h0, z_seq, a_seq, packed):
    """Whole-sequence rollout inside one kernel (weights loaded once per sequence).

    h0: (B, R); z_seq: (T, B, L); a_seq: (T, B, A)  ->  (T, B, R) hidden states.
    """
    L, A, H, R, Kp, Hp, Rp = packed["dims"]
    T, B = z_seq.shape[0], z_seq.shape[1]
    B8 = _round_up(B, SUBLANE)
    Bt = _choose_batch_tile(B8)
    Bp = _round_up(B8, Bt)

    h0_p = (h0 if (Bp == B and Rp == R)
            else jnp.zeros((Bp, Rp), jnp.float32).at[:B, :R].set(h0))
    za_seq = (jnp.zeros((T, Bp, Kp), jnp.float32)
              .at[:, :B, :L].set(z_seq).at[:, :B, L:L + A].set(a_seq))

    weight_bytes = _weight_bytes(packed)
    act_tile_bytes = 4 * Bt * (Kp + 2 * Rp)
    cost = pl.CostEstimate(
        flops=int(2 * Bp * T * (Kp * Hp + Hp * 3 * Rp + Rp * 3 * Rp)),
        transcendentals=int(Bp * T * (Hp + 3 * Rp)),
        bytes_accessed=int(weight_bytes + 4 * (Bp * Rp + T * Bp * (Kp + Rp))))

    hseq = pl.pallas_call(
        recurrent_rollout_kernel,
        out_shape=jax.ShapeDtypeStruct((T, Bp, Rp), jnp.float32),
        grid=(Bp // Bt, T),
        in_specs=[
            pl.BlockSpec((Bt, Rp), lambda i, t: (i, 0)),            # h0
            pl.BlockSpec((None, Bt, Kp), lambda i, t: (t, i, 0)),   # cat(z, a)(t)
            *_weight_specs(Kp, Hp, Rp, 2),
        ],
        out_specs=pl.BlockSpec((None, Bt, Rp), lambda i, t: (t, i, 0)),
        scratch_shapes=[pltpu.VMEM((Bt, Rp), jnp.float32)],          # carried h
        compiler_params=pltpu.CompilerParams(
            dimension_semantics=("parallel", "arbitrary"),
            vmem_limit_bytes=_vmem_limit(weight_bytes, act_tile_bytes)),
        cost_estimate=cost,
    )(h0_p, za_seq, packed["wl"], packed["bl"], packed["wgx"], packed["wgh"],
      packed["bgx"], packed["bgh"])

    return hseq[:, :B, :R]


# -----------------------------------------------------------------------------
# Pure-JAX references (mirror the bf16-operand / f32-accumulate math)
# -----------------------------------------------------------------------------
def _reference_step(h, z, a, params):
    bf, f32 = jnp.bfloat16, jnp.float32
    wl = jnp.concatenate([params["wl_z"], params["wl_a"]], axis=0).astype(bf)
    za = jnp.concatenate([z, a], axis=-1).astype(bf)
    pre = jnp.dot(za, wl, preferred_element_type=f32) + params["b_l"][None, :]
    x = jnp.where(pre > 0, pre, jnp.exp(jnp.minimum(pre, 0.0)) - 1.0)
    gi = jnp.dot(x.astype(bf), params["w_ih"].astype(bf),
                 preferred_element_type=f32) + params["b_ih"][None, :]
    gh = jnp.dot(h.astype(bf), params["w_hh"].astype(bf),
                 preferred_element_type=f32) + params["b_hh"][None, :]
    R = h.shape[1]
    r = jax.nn.sigmoid(gi[:, :R] + gh[:, :R])
    zg = jax.nn.sigmoid(gi[:, R:2 * R] + gh[:, R:2 * R])
    n = jnp.tanh(gi[:, 2 * R:] + r * gh[:, 2 * R:])
    return (1.0 - zg) * n + zg * h


def _reference_rollout(h0, z_seq, a_seq, params):
    def step(h, zt_at):
        zt, at = zt_at
        h_new = _reference_step(h, zt, at, params)
        return h_new, h_new
    _, hs = jax.lax.scan(step, h0, (z_seq, a_seq))
    return hs


if __name__ == "__main__":
    # Small shapes consistent with the module's forward.
    B = 8          # batch
    LATENT = 32    # latentSize
    ACTION = 16    # actionSize
    HIDDEN = 64    # config.hiddenSize
    RECUR = 32     # recurrentSize
    T = 6          # rollout length (in-kernel time loop demo)

    key = jax.random.PRNGKey(0)
    k_h, k_z, k_a, k_zs, k_as, k_p = jax.random.split(key, 6)

    h = jax.random.normal(k_h, (B, RECUR), jnp.float32)
    z = jax.random.normal(k_z, (B, LATENT), jnp.float32)
    a = jax.random.normal(k_a, (B, ACTION), jnp.float32)
    z_seq = jax.random.normal(k_zs, (T, B, LATENT), jnp.float32)
    a_seq = jax.random.normal(k_as, (T, B, ACTION), jnp.float32)

    params = init_params(k_p, LATENT, ACTION, HIDDEN, RECUR)
    packed = pack_params(params, LATENT, ACTION, HIDDEN, RECUR)

    # Single-step forward (matches the nn.Module's forward).
    out = jax.block_until_ready(recurrent_model_forward(h, z, a, packed))
    ref = _reference_step(h, z, a, params)
    assert out.shape == (B, RECUR)
    assert jnp.allclose(out, ref, atol=5e-3, rtol=5e-3), (
        float(jnp.max(jnp.abs(out - ref))))

    # In-kernel time loop: weights stream from HBM once for the whole sequence.
    hseq = jax.block_until_ready(recurrent_model_rollout(h, z_seq, a_seq, packed))
    href = _reference_rollout(h, z_seq, a_seq, params)
    assert hseq.shape == (T, B, RECUR)
    assert jnp.allclose(hseq, href, atol=1e-2, rtol=1e-2), (
        float(jnp.max(jnp.abs(hseq - href))))

    print("KERNEL_OK")
</pallas_src>

<mosaic_0001>
module attributes {stable_mosaic.version = 11 : i64} {
  func.func @recurrent_step_kernel(%arg0: i32, %arg1: memref<8x128xf32, #tpu.memory_space<vmem>>, %arg2: memref<8x128xf32, #tpu.memory_space<vmem>>, %arg3: memref<128x128xbf16, #tpu.memory_space<vmem>>, %arg4: memref<1x128xf32, #tpu.memory_space<vmem>>, %arg5: memref<128x384xbf16, #tpu.memory_space<vmem>>, %arg6: memref<128x384xbf16, #tpu.memory_space<vmem>>, %arg7: memref<1x384xf32, #tpu.memory_space<vmem>>, %arg8: memref<1x384xf32, #tpu.memory_space<vmem>>, %arg9: memref<8x128xf32, #tpu.memory_space<vmem>>) attributes {dimension_semantics = [#tpu.dimension_semantics<parallel>], iteration_bounds = array<i64: 1>, scalar_prefetch = 0 : i64, scratch_operands = 0 : i64, tpu.core_type = #tpu.core_type<tc>, window_params = [{transform_indices = @transform_0, window_bounds = array<i64: 8, 128>}, {transform_indices = @transform_1, window_bounds = array<i64: 8, 128>}, {pipeline_mode = #tpu.pipeline_mode<synchronous>, transform_indices = @transform_2, window_bounds = array<i64: 128, 128>}, {pipeline_mode = #tpu.pipeline_mode<synchronous>, transform_indices = @transform_3, window_bounds = array<i64: 1, 128>}, {pipeline_mode = #tpu.pipeline_mode<synchronous>, transform_indices = @transform_4, window_bounds = array<i64: 128, 384>}, {pipeline_mode = #tpu.pipeline_mode<synchronous>, transform_indices = @transform_5, window_bounds = array<i64: 128, 384>}, {pipeline_mode = #tpu.pipeline_mode<synchronous>, transform_indices = @transform_6, window_bounds = array<i64: 1, 384>}, {pipeline_mode = #tpu.pipeline_mode<synchronous>, transform_indices = @transform_7, window_bounds = array<i64: 1, 384>}, {transform_indices = @transform_8, window_bounds = array<i64: 8, 128>}]} {
    %c0 = arith.constant 0 : index
    %c0_0 = arith.constant 0 : index
    %0 = vector.load %arg1[%c0, %c0_0] : memref<8x128xf32, #tpu.memory_space<vmem>>, vector<8x128xf32>
    %c0_1 = arith.constant 0 : index
    %c0_2 = arith.constant 0 : index
    %1 = vector.load %arg2[%c0_1, %c0_2] : memref<8x128xf32, #tpu.memory_space<vmem>>, vector<8x128xf32>
    %c0_3 = arith.constant 0 : index
    %c0_4 = arith.constant 0 : index
    %2 = vector.load %arg3[%c0_3, %c0_4] : memref<128x128xbf16, #tpu.memory_space<vmem>>, vector<128x128xbf16>
    %c0_5 = arith.constant 0 : index
    %c0_6 = arith.constant 0 : index
    %3 = vector.load %arg4[%c0_5, %c0_6] : memref<1x128xf32, #tpu.memory_space<vmem>>, vector<1x128xf32>
    %c0_7 = arith.constant 0 : index
    %c0_8 = arith.constant 0 : index
    %4 = vector.load %arg5[%c0_7, %c0_8] : memref<128x384xbf16, #tpu.memory_space<vmem>>, vector<128x384xbf16>
    %c0_9 = arith.constant 0 : index
    %c0_10 = arith.constant 0 : index
    %5 = vector.load %arg6[%c0_9, %c0_10] : memref<128x384xbf16, #tpu.memory_space<vmem>>, vector<128x384xbf16>
    %c0_11 = arith.constant 0 : index
    %c0_12 = arith.constant 0 : index
    %6 = vector.load %arg7[%c0_11, %c0_12] : memref<1x384xf32, #tpu.memory_space<vmem>>, vector<1x384xf32>
    %c0_13 = arith.constant 0 : index
    %c0_14 = arith.constant 0 : index
    %7 = vector.load %arg8[%c0_13, %c0_14] : memref<1x384xf32, #tpu.memory_space<vmem>>, vector<1x384xf32>
    %8 = arith.truncf %1 : vector<8x128xf32> to vector<8x128xbf16>
    %cst = arith.constant dense<0.000000e+00> : vector<8x128xf32>
    %9 = tpu.matmul %8, %2, %cst {dimension_numbers = #tpu.dot_dimension_numbers<[1], [0], [0], [1], [0, 0, 1, 1], [], []>} : vector<8x128xbf16>, vector<128x128xbf16>, vector<8x128xf32> -> vector<8x128xf32>
    %10 = vector.broadcast %3 : vector<1x128xf32> to vector<8x128xf32>
    %11 = arith.addf %9, %10 : vector<8x128xf32>
    %cst_15 = arith.constant 0.000000e+00 : f32
    %12 = vector.broadcast %cst_15 : f32 to vector<8x128xf32>
    %13 = arith.cmpf ogt, %11, %12 : vector<8x128xf32>
    %cst_16 = arith.constant 0.000000e+00 : f32
    %14 = vector.broadcast %cst_16 : f32 to vector<8x128xf32>
    %15 = arith.minimumf %11, %14 : vector<8x128xf32>
    %16 = math.exp %15 : vector<8x128xf32>
    %cst_17 = arith.constant 1.000000e+00 : f32
    %17 = vector.broadcast %cst_17 : f32 to vector<8x128xf32>
    %18 = arith.subf %16, %17 : vector<8x128xf32>
    %19 = arith.select %13, %11, %18 : vector<8x128xi1>, vector<8x128xf32>
    %20 = arith.truncf %19 : vector<8x128xf32> to vector<8x128xbf16>
    %cst_18 = arith.constant dense<0.000000e+00> : vector<8x384xf32>
    %21 = tpu.matmul %20, %4, %cst_18 {dimension_numbers = #tpu.dot_dimension_numbers<[1], [0], [0], [1], [0, 0, 1, 1], [], []>} : vector<8x128xbf16>, vector<128x384xbf16>, vector<8x384xf32> -> vector<8x384xf32>
    %22 = vector.broadcast %6 : vector<1x384xf32> to vector<8x384xf32>
    %23 = arith.addf %21, %22 : vector<8x384xf32>
    %24 = arith.truncf %0 : vector<8x128xf32> to vector<8x128xbf16>
    %cst_19 = arith.constant dense<0.000000e+00> : vector<8x384xf32>
    %25 = tpu.matmul %24, %5, %cst_19 {dimension_numbers = #tpu.dot_dimension_numbers<[1], [0], [0], [1], [0, 0, 1, 1], [], []>} : vector<8x128xbf16>, vector<128x384xbf16>, vector<8x384xf32> -> vector<8x384xf32>
    %26 = vector.broadcast %7 : vector<1x384xf32> to vector<8x384xf32>
    %27 = arith.addf %25, %26 : vector<8x384xf32>
    %28 = vector.extract_strided_slice %23 {offsets = [0, 0], sizes = [8, 128], strides = [1, 1]} : vector<8x384xf32> to vector<8x128xf32>
    %29 = vector.extract_strided_slice %27 {offsets = [0, 0], sizes = [8, 128], strides = [1, 1]} : vector<8x384xf32> to vector<8x128xf32>
    %30 = arith.addf %28, %29 : vector<8x128xf32>
    %31 = arith.negf %30 : vector<8x128xf32>
    %32 = math.exp %31 : vector<8x128xf32>
    %cst_20 = arith.constant 1.000000e+00 : f32
    %33 = vector.broadcast %cst_20 : f32 to vector<8x128xf32>
    %34 = arith.addf %33, %32 : vector<8x128xf32>
    %35 = arith.divf %33, %34 : vector<8x128xf32>
    %36 = vector.extract_strided_slice %23 {offsets = [0, 128], sizes = [8, 128], strides = [1, 1]} : vector<8x384xf32> to vector<8x128xf32>
    %37 = vector.extract_strided_slice %27 {offsets = [0, 128], sizes = [8, 128], strides = [1, 1]} : vector<8x384xf32> to vector<8x128xf32>
    %38 = arith.addf %36, %37 : vector<8x128xf32>
    %39 = arith.negf %38 : vector<8x128xf32>
    %40 = math.exp %39 : vector<8x128xf32>
    %cst_21 = arith.constant 1.000000e+00 : f32
    %41 = vector.broadcast %cst_21 : f32 to vector<8x128xf32>
    %42 = arith.addf %41, %40 : vector<8x128xf32>
    %43 = arith.divf %41, %42 : vector<8x128xf32>
    %44 = vector.extract_strided_slice %23 {offsets = [0, 256], sizes = [8, 128], strides = [1, 1]} : vector<8x384xf32> to vector<8x128xf32>
    %45 = vector.extract_strided_slice %27 {offsets = [0, 256], sizes = [8, 128], strides = [1, 1]} : vector<8x384xf32> to vector<8x128xf32>
    %46 = arith.mulf %35, %45 : vector<8x128xf32>
    %47 = arith.addf %44, %46 : vector<8x128xf32>
    %48 = math.tanh %47 : vector<8x128xf32>
    %cst_22 = arith.constant 1.000000e+00 : f32
    %49 = vector.broadcast %cst_22 : f32 to vector<8x128xf32>
    %50 = arith.subf %49, %43 : vector<8x128xf32>
    %51 = arith.mulf %50, %48 : vector<8x128xf32>
    %52 = arith.mulf %43, %0 : vector<8x128xf32>
    %53 = arith.addf %51, %52 : vector<8x128xf32>
    %c0_23 = arith.constant 0 : index
    %c0_24 = arith.constant 0 : index
    %54 = vector.load %arg9[%c0_23, %c0_24] : memref<8x128xf32, #tpu.memory_space<vmem>>, vector<8x128xf32>
    tpu.vector_store %arg9[%c0_23, %c0_24], %53 {strides = array<i32>} : memref<8x128xf32, #tpu.memory_space<vmem>>, vector<8x128xf32>,
    return
  }
  func.func @transform_0(%arg0: i32) -> (i32, i32) {
    %c0_i32 = arith.constant 0 : i32
    %c0_i32_0 = arith.constant 0 : i32
    return %arg0, %c0_i32 : i32, i32
  }
  func.func @transform_1(%arg0: i32) -> (i32, i32) {
    %c0_i32 = arith.constant 0 : i32
    %c0_i32_0 = arith.constant 0 : i32
    return %arg0, %c0_i32 : i32, i32
  }
  func.func @transform_2(%arg0: i32) -> (i32, i32) {
    %c0_i32 = arith.constant 0 : i32
    %c0_i32_0 = arith.constant 0 : i32
    %c0_i32_1 = arith.constant 0 : i32
    return %c0_i32, %c0_i32_0 : i32, i32
  }
  func.func @transform_3(%arg0: i32) -> (i32, i32) {
    %c0_i32 = arith.constant 0 : i32
    %c0_i32_0 = arith.constant 0 : i32
    %c0_i32_1 = arith.constant 0 : i32
    return %c0_i32, %c0_i32_0 : i32, i32
  }
  func.func @transform_4(%arg0: i32) -> (i32, i32) {
    %c0_i32 = arith.constant 0 : i32
    %c0_i32_0 = arith.constant 0 : i32
    %c0_i32_1 = arith.constant 0 : i32
    return %c0_i32, %c0_i32_0 : i32, i32
  }
  func.func @transform_5(%arg0: i32) -> (i32, i32) {
    %c0_i32 = arith.constant 0 : i32
    %c0_i32_0 = arith.constant 0 : i32
    %c0_i32_1 = arith.constant 0 : i32
    return %c0_i32, %c0_i32_0 : i32, i32
  }
  func.func @transform_6(%arg0: i32) -> (i32, i32) {
    %c0_i32 = arith.constant 0 : i32
    %c0_i32_0 = arith.constant 0 : i32
    %c0_i32_1 = arith.constant 0 : i32
    return %c0_i32, %c0_i32_0 : i32, i32
  }
  func.func @transform_7(%arg0: i32) -> (i32, i32) {
    %c0_i32 = arith.constant 0 : i32
    %c0_i32_0 = arith.constant 0 : i32
    %c0_i32_1 = arith.constant 0 : i32
    return %c0_i32, %c0_i32_0 : i32, i32
  }
  func.func @transform_8(%arg0: i32) -> (i32, i32) {
    %c0_i32 = arith.constant 0 : i32
    %c0_i32_0 = arith.constant 0 : i32
    return %arg0, %c0_i32 : i32, i32
  }
}

</mosaic_0001>

<bundles_post_ra>
// kernel: tpu_custom_call.1
= control target key start
LH: loop header
LB: loop body
LE: loop exit
PB: predicated region body
PF: predicated region fallthrough
CT: control target
= control target key end

     0   :  { %13 = vsyncpa [#allocation3], 0  ;;  %s1289_s0 = inlined_call_operand.hbm [shape: f32[8,128], index: 0, kind: input, shape index: {}, may-alias: {0,8}]   ;;  %s1290_s1 = inlined_call_operand.vmem [shape: f32[8,128], index: 1, kind: input, shape index: {}]   ;;  %s1291_s2 = inlined_call_operand.hbm [shape: bf16[128,128], index: 2, kind: input, shape index: {}]   ;;  %s1292_s3 = inlined_call_operand.vmem [shape: f32[1,128], index: 3, kind: input, shape index: {}]   ;;  %s1293_s4 = inlined_call_operand.hbm [shape: bf16[128,384], index: 4, kind: input, shape index: {}]   ;;  %s1294_s5 = inlined_call_operand.hbm [shape: bf16[128,384], index: 5, kind: input, shape index: {}]   ;;  %s1295_s6 = inlined_call_operand.vmem [shape: f32[1,384], index: 6, kind: input, shape index: {}]   ;;  %s1296_s7 = inlined_call_operand.vmem [shape: f32[1,384], index: 7, kind: input, shape index: {}]   ;;  %s1297_s8 = inlined_call_operand.hbm [shape: f32[8,128], index: 8, kind: output, shape index: {}, may-alias: {0,8}]  }
   0x1   :  { %14 = vsyncpa [#allocation6], 0 }
   0x2   :  { %15 = vsyncpa [#allocation9], 0 }
   0x3   :  { %16 = vsyncpa [#allocation4], 0  ;;  %s1130_s27 = smov [#allocation5]   ;;  %s1012_s9 = scalar_lea.hbm %s1291_s2, 1024 }
   0x4   :  { %s34_s28 = sshll.u32 %s1130_s27, 4  ;;  %p1013_p0 = scmp.ne.s32.totalorder %s1291_s2, %s1012_s9  ;;  %s35_s28 = int_to_ptr.vmem [resolvable:$true] %s34_s28 }
   0x5   :  { %p1016_p1 = scmp.lt.u32.totalorder %s1012_s9, %s1291_s2 }
   0x7   :  { %p1018_p2 = pnand %p1016_p1, %p1013_p0 }
   0x9   :  { %1021 = shalt.err (!%p1018_p2)
}
   0xa   :  { %s1022_s14 = scalar_lea.vmem %s35_s28, 1024  ;;  %p1027_p4 = scmp.lt.s32.totalorder %s35_s28, %s35_s28 }
   0xb   :  { %p1023_p3 = scmp.ne.s32.totalorder %s35_s28, %s1022_s14  ;;  %p1028_p5 = scmp.lt.s32.totalorder %s1022_s14, %s1022_s14 }
   0xd   :  { %p1029_p6 = por %p1028_p5, %p1027_p4 }
   0xf   :  { %p1030_p7 = pnand %p1029_p6, %p1023_p3 }
  0x11   :  { %1033 = shalt.err (!%p1030_p7)
}
  0x12   :  { %s1131_s15 = smov 64   ;;  %s1132_s16 = smov 4  }
  0x13   :  { %40 = dma.hbm_to_vmem [thread:$0]  %s1291_s2, 1024, %s35_s28, [#allocation6], %s1131_s15, %s1131_s15, %s1132_s16  }
  0x14   :  { %s1133_s19 = smov [#allocation2]   ;;  %s1134_s21 = smov [#allocation7]  }
  0x15   :  { %s23_s20 = sshll.u32 %s1133_s19, 4  ;;  %s48_s22 = sshll.u32 %s1134_s21, 4  ;;  %s24_s20 = int_to_ptr.vmem [resolvable:$true] %s23_s20  ;;  %s49_s22 = int_to_ptr.vmem [resolvable:$true] %s48_s22 }
  0x16   :  { %s1034_s25 = scalar_lea.hbm %s1289_s0, 128 }
  0x17   :  { %p1035_p8 = scmp.ne.s32.totalorder %s1289_s0, %s1034_s25  ;;  %p1038_p9 = scmp.lt.u32.totalorder %s1034_s25, %s1289_s0 }
  0x19   :  { %p1040_p10 = pnand %p1038_p9, %p1035_p8 }
  0x1b   :  { %1043 = shalt.err (!%p1040_p10)
}
  0x1c   :  { %s1044_s2 = scalar_lea.vmem %s24_s20, 128  ;;  %p1049_p12 = scmp.lt.s32.totalorder %s24_s20, %s24_s20 }
  0x1d   :  { %p1045_p11 = scmp.ne.s32.totalorder %s24_s20, %s1044_s2  ;;  %p1050_p13 = scmp.lt.s32.totalorder %s1044_s2, %s1044_s2 }
  0x1f   :  { %p1051_p0 = por %p1050_p13, %p1049_p12 }
  0x21   :  { %p1052_p1 = pnand %p1051_p0, %p1045_p11 }
  0x23   :  { %1055 = shalt.err (!%p1052_p1)
}
  0x24   :  { %26 = dma.hbm_to_vmem [thread:$0]  %s1289_s0, 128, %s24_s20, [#allocation3]  }
  0x25   :  { %s1056_s12 = scalar_lea.hbm %s1293_s4, 3072 }
  0x26   :  { %p1057_p2 = scmp.ne.s32.totalorder %s1293_s4, %s1056_s12  ;;  %p1060_p3 = scmp.lt.u32.totalorder %s1056_s12, %s1293_s4 }
  0x28   :  { %p1062_p4 = pnand %p1060_p3, %p1057_p2 }
  0x2a   :  { %1065 = shalt.err (!%p1062_p4)
}
  0x2b   :  { %s1066_s17 = scalar_lea.vmem %s49_s22, 3072  ;;  %p1071_p6 = scmp.lt.s32.totalorder %s49_s22, %s49_s22 }
  0x2c   :  { %p1067_p5 = scmp.ne.s32.totalorder %s49_s22, %s1066_s17  ;;  %p1072_p7 = scmp.lt.s32.totalorder %s1066_s17, %s1066_s17 }
  0x2e   :  { %p1073_p8 = por %p1072_p7, %p1071_p6 }
  0x30   :  { %p1074_p9 = pnand %p1073_p8, %p1067_p5 }
  0x32   :  { %1077 = shalt.err (!%p1074_p9)
}
  0x33   :  { %s1135_s0 = smov 192   ;;  %s1136_s18 = smov 12  }
  0x34   :  { %54 = dma.hbm_to_vmem [thread:$0]  %s1293_s4, 3072, %s49_s22, [#allocation6], %s1135_s0, %s1135_s0, %s1136_s18  }
  0x35   :  { %s1137_s21 = smov [#allocation8]   ;;  %s1078_s26 = scalar_lea.hbm %s1294_s5, 3072 }
  0x36   :  { %s60_s23 = sshll.u32 %s1137_s21, 4  ;;  %p1079_p10 = scmp.ne.s32.totalorder %s1294_s5, %s1078_s26  ;;  %s61_s23 = int_to_ptr.vmem [resolvable:$true] %s60_s23 }
  0x37   :  { %p1082_p11 = scmp.lt.u32.totalorder %s1078_s26, %s1294_s5 }
  0x39   :  { %p1084_p12 = pnand %p1082_p11, %p1079_p10 }
  0x3b   :  { %1087 = shalt.err (!%p1084_p12)
}
  0x3c   :  { %s1088_s28 = scalar_lea.vmem %s61_s23, 3072  ;;  %p1093_p0 = scmp.lt.s32.totalorder %s61_s23, %s61_s23 }
  0x3d   :  { %p1089_p13 = scmp.ne.s32.totalorder %s61_s23, %s1088_s28  ;;  %p1094_p1 = scmp.lt.s32.totalorder %s1088_s28, %s1088_s28 }
  0x3f   :  { %p1095_p2 = por %p1094_p1, %p1093_p0 }
  0x41   :  { %p1096_p3 = pnand %p1095_p2, %p1089_p13 }
  0x43   :  { %1099 = shalt.err (!%p1096_p3)
}
  0x44   :  { %66 = dma.hbm_to_vmem [thread:$0]  %s1294_s5, 3072, %s61_s23, [#allocation9], %s1135_s0, %s1135_s0, %s1136_s18  }
  0x45   :  { %1122 = dma.done.wait [#allocation3], 128  }
  0x46   :  { %1123 = vsyncadd [#allocation3], 4294967168 }
  0x47   :  { %1124 = dma.done.wait [#allocation6], 4096  }
  0x48   :  { %1125 = vsyncadd [#allocation6], 4294963200 }
  0x49   :  { %1126 = dma.done.wait [#allocation9], 3072  }
  0x4a   :  { %1127 = vsyncadd [#allocation9], 4294964224  ;;  %v1138_v0 = vmov 0.0   ;;  %vm1139_vm0 = vmmov 0   ;;  %v928_v1 = vld [vmem:[#allocation5] sm:$0xff]   ;;  %v929_v2 = vld [vmem:[#allocation5 + $0x8] sm:$0xff]  }
  0x4b   :  { %848 = vmatprep.subr.bf16.mxu0 %v1138_v0  ;;  %864 = vmatprep.mubr.msk.bf16.mxu0 %vm1139_vm0, %v1138_v0  ;;  %v930_v3 = vld [vmem:[#allocation5 + $0x10] sm:$0xff]   ;;  %v938_v5 = vld [vmem:[#allocation7] ss:$12 sps:$4 sm:$0xff]   ;;  %v931_v6 = vld [vmem:[#allocation5 + $0x18] sm:$0xff]   ;;  %v1140_v31 = vmov 0  }
  0x4c   :  { %849 = vmatpush3.bf16.msra.mxu0 %v928_v1  ;;  %v936_v4 = vld [vmem:[#allocation7 + $0x4] ss:$12 sps:$4 sm:$0xff]   ;;  %v940_v7 = vld [vmem:[#allocation7 + $0x1c] ss:$12 sps:$4 sm:$0xff]   ;;  %v944_v9 = vld [vmem:[#allocation7 + $0x34] ss:$12 sps:$4 sm:$0xff]   ;;  %447 = vmatprep.mubr.bf16.mxu1 %v1140_v31 }
  0x4d   :  { %850 = vmatprep.subr.bf16.mxu0 %v1138_v0  ;;  %415 = vmatprep.subr.bf16.mxu1 %v936_v4  ;;  %v942_v8 = vld [vmem:[#allocation7 + $0x18] ss:$12 sps:$4 sm:$0xff]   ;;  %v946_v11 = vld [vmem:[#allocation7 + $0x30] ss:$12 sps:$4 sm:$0xff]   ;;  %v933_v12 = vld [vmem:[#allocation5 + $0x28] sm:$0xff]  }
  0x4e   :  { %416 = vmatpush1.bf16.msra.mxu1 %v938_v5  ;;  %v932_v10 = vld [vmem:[#allocation5 + $0x20] sm:$0xff]   ;;  %v934_v13 = vld [vmem:[#allocation5 + $0x30] sm:$0xff]   ;;  %v935_v14 = vld [vmem:[#allocation5 + $0x38] sm:$0xff]  }
  0x4f   :  { %417 = vmatprep.subr.bf16.mxu1 %v940_v7  ;;  %v85_v15 = vld [vmem:[%s1290_s1] sm:$0xff]  ;;  %v939_v16 = vld [vmem:[#allocation7 + $0x8] ss:$12 sps:$4 sm:$0xff]   ;;  %v943_v18 = vld [vmem:[#allocation7 + $0x20] ss:$12 sps:$4 sm:$0xff]  }
  0x50   :  { %851 = vmatpush3.bf16.msra.mxu0 %v929_v2  ;;  %v169_v17 = vpack.c.bf16 %v85_v15, %v85_v15  ;;  %v947_v19 = vld [vmem:[#allocation7 + $0x38] ss:$12 sps:$4 sm:$0xff]   ;;  %v950_v21 = vld [vmem:[#allocation7 + $0x48] ss:$12 sps:$4 sm:$0xff]   ;;  %v951_v22 = vld [vmem:[#allocation7 + $0x50] ss:$12 sps:$4 sm:$0xff]   ;;  %v272_v15 = vlaneseq }
  0x51   :  { %852 = vmatprep.subr.bf16.mxu0 %v1138_v0  ;;  %v948_v20 = vld [vmem:[#allocation7 + $0x4c] ss:$12 sps:$4 sm:$0xff]   ;;  %v952_v23 = vld [vmem:[#allocation7 + $0x64] ss:$12 sps:$4 sm:$0xff]   ;;  %v955_v25 = vld [vmem:[#allocation7 + $0x68] ss:$12 sps:$4 sm:$0xff]  }
  0x52   :  { %418 = vmatpush1.bf16.msra.mxu1 %v942_v8  ;;  %v954_v24 = vld [vmem:[#allocation7 + $0x60] ss:$12 sps:$4 sm:$0xff]   ;;  %v956_v26 = vld [vmem:[#allocation7 + $0x7c] ss:$12 sps:$4 sm:$0xff]   ;;  %v958_v27 = vld [vmem:[#allocation7 + $0x78] ss:$12 sps:$4 sm:$0xff]  }
  0x53   :  { %419 = vmatprep.subr.bf16.mxu1 %v944_v9  ;;  %v959_v28 = vld [vmem:[#allocation7 + $0x80] ss:$12 sps:$4 sm:$0xff]   ;;  %v962_v30 = vld [vmem:[#allocation7 + $0x90] ss:$12 sps:$4 sm:$0xff]   ;;  %v963_v32 = vld [vmem:[#allocation7 + $0x98] ss:$12 sps:$4 sm:$0xff]  }
  0x54   :  { %853 = vmatpush3.bf16.msra.mxu0 %v930_v3  ;;  %v960_v29 = vld [vmem:[#allocation7 + $0x94] ss:$12 sps:$4 sm:$0xff]   ;;  %v964_v33 = vld [vmem:[#allocation7 + $0xac] ss:$12 sps:$4 sm:$0xff]   ;;  %v967_v35 = vld [vmem:[#allocation7 + $0xb0] ss:$12 sps:$4 sm:$0xff]  }
  0x55   :  { %854 = vmatprep.subr.bf16.mxu0 %v1138_v0  ;;  %v966_v34 = vld [vmem:[#allocation7 + $0xa8] ss:$12 sps:$4 sm:$0xff]   ;;  %v970_v36 = vld [vmem:[#allocation8 + $0x4] ss:$12 sps:$4 sm:$0xff]   ;;  %v761_v37 = vld [vmem:[%s1292_s3] ss:$0 sm:$0xff] }
  0x56   :  { %420 = vmatpush1.bf16.msra.mxu1 %v946_v11  ;;  %v968_v47 = vld [vmem:[#allocation8] ss:$12 sps:$4 sm:$0xff]   ;;  %v989_v49 = vld [vmem:[#allocation8 + $0x8] ss:$12 sps:$4 sm:$0xff]   ;;  %v971_v52 = vld [vmem:[#allocation8 + $0x18] ss:$12 sps:$4 sm:$0xff]  }
  0x57   :  { %421 = vmatprep.subr.bf16.mxu1 %v948_v20  ;;  %v973_v51 = vld [vmem:[#allocation8 + $0x1c] ss:$12 sps:$4 sm:$0xff]   ;;  %v993_v53 = vld [vmem:[#allocation8 + $0x20] ss:$12 sps:$4 sm:$0xff]   ;;  %v994_v56 = vld [vmem:[#allocation8 + $0x38] ss:$12 sps:$4 sm:$0xff]  }
  0x58   :  { %855 = vmatpush3.bf16.msra.mxu0 %v931_v6  ;;  %v976_v54 = vld [vmem:[#allocation8 + $0x34] ss:$12 sps:$4 sm:$0xff]   ;;  %v974_v55 = vld [vmem:[#allocation8 + $0x30] ss:$12 sps:$4 sm:$0xff]   ;;  %v979_v57 = vld [vmem:[#allocation8 + $0x4c] ss:$12 sps:$4 sm:$0xff]  }
  0x59   :  { %856 = vmatprep.subr.bf16.mxu0 %v1138_v0  ;;  %v977_v58 = vld [vmem:[#allocation8 + $0x48] ss:$12 sps:$4 sm:$0xff]   ;;  %v995_v59 = vld [vmem:[#allocation8 + $0x50] ss:$12 sps:$4 sm:$0xff]   ;;  %v980_v61 = vld [vmem:[#allocation8 + $0x60] ss:$12 sps:$4 sm:$0xff]  }
  0x5a   :  { %422 = vmatpush1.bf16.msra.mxu1 %v950_v21  ;;  %v982_v60 = vld [vmem:[#allocation8 + $0x64] ss:$12 sps:$4 sm:$0xff]   ;;  %v996_v62 = vld [vmem:[#allocation8 + $0x68] ss:$12 sps:$4 sm:$0xff]   ;;  %v997_v2 = vld [vmem:[#allocation8 + $0x80] ss:$12 sps:$4 sm:$0xff]  }
  0x5b   :  { %423 = vmatprep.subr.bf16.mxu1 %v952_v23  ;;  %v985_v63 = vld [vmem:[#allocation8 + $0x7c] ss:$12 sps:$4 sm:$0xff]   ;;  %v983_v1 = vld [vmem:[#allocation8 + $0x78] ss:$12 sps:$4 sm:$0xff]   ;;  %v988_v3 = vld [vmem:[#allocation8 + $0x94] ss:$12 sps:$4 sm:$0xff]  }
  0x5c   :  { %857 = vmatpush3.bf16.msra.mxu0 %v932_v10  ;;  %v986_v4 = vld [vmem:[#allocation8 + $0x90] ss:$12 sps:$4 sm:$0xff]   ;;  %v998_v5 = vld [vmem:[#allocation8 + $0x98] ss:$12 sps:$4 sm:$0xff]   ;;  %v990_v7 = vld [vmem:[#allocation8 + $0xa8] ss:$12 sps:$4 sm:$0xff]  }
  0x5d   :  { %858 = vmatprep.subr.bf16.mxu0 %v1138_v0  ;;  %v992_v6 = vld [vmem:[#allocation8 + $0xac] ss:$12 sps:$4 sm:$0xff]   ;;  %v999_v9 = vld [vmem:[#allocation8 + $0xb0] ss:$12 sps:$4 sm:$0xff]  }
  0x5e   :  { %424 = vmatpush1.bf16.msra.mxu1 %v954_v24  ;;  %v84_v8 = vld [vmem:[#allocation2] sm:$0xff] }
  0x5f   :  { %425 = vmatprep.subr.bf16.mxu1 %v956_v26  ;;  %v496_v10 = vpack.c.bf16 %v84_v8, %v84_v8 }
  0x60   :  { %859 = vmatpush3.bf16.msra.mxu0 %v933_v12 }
  0x61   :  { %860 = vmatprep.subr.bf16.mxu0 %v1138_v0 }
  0x62   :  { %426 = vmatpush1.bf16.msra.mxu1 %v958_v27 }
  0x63   :  { %427 = vmatprep.subr.bf16.mxu1 %v960_v29 }
  0x64   :  { %861 = vmatpush3.bf16.msra.mxu0 %v934_v13 }
  0x65   :  { %862 = vmatprep.subr.bf16.mxu0 %v1138_v0 }
  0x66   :  { %428 = vmatpush1.bf16.msra.mxu1 %v962_v30 }
  0x67   :  { %429 = vmatprep.subr.bf16.mxu1 %v964_v33 }
  0x68   :  { %863 = vmatpush3.bf16.msra.mxu0 %v935_v14 }
  0x69   :  { %868 = vmatprep.subr.bf16.mxu0 %v1138_v0 }
  0x6a   :  { %430 = vmatpush1.bf16.msra.mxu1 %v966_v34 }
  0x6b   :  { %865 = vmatmul.mubr.bf16.vlgmr.msra.gmra.mrb[0].mxu0 %v169_v17  ;;  %641 = vmatprep.subr.bf16.mxu1 %v970_v36 }
  0x6c   :  { %869 = vmatpush3.bf16.msra.mxu0 %v939_v16  ;;  %884 = vmatprep.mubr.msk.bf16.mxu0 %vm1139_vm0, %v1138_v0  ;;  %v273_v16 = vshrl.u32 %v272_v15, 7 }
  0x6d   :  { %870 = vmatprep.subr.bf16.mxu0 %v1138_v0 }
  0x6e   :  { %v274_v17 = vsub.s32 0, %v273_v16 }
  0x70   :  { %871 = vmatpush3.bf16.msra.mxu0 %v943_v18  ;;  %v168_v18 = vld [vmem:[%s1296_s7] sm:$0x7] }
  0x71   :  { %872 = vmatprep.subr.bf16.mxu0 %v1138_v0  ;;  %v501_v21 = vrot.slane %v168_v18, %v274_v17 }
  0x74   :  { %873 = vmatpush3.bf16.msra.mxu0 %v947_v19  ;;  %v278_v19 = vsub.s32 1, %v273_v16 }
  0x75   :  { %874 = vmatprep.subr.bf16.mxu0 %v1138_v0 }
  0x76   :  { %v505_v23 = vrot.slane %v168_v18, %v278_v19 }
  0x78   :  { %875 = vmatpush3.bf16.msra.mxu0 %v951_v22 }
  0x79   :  { %876 = vmatprep.subr.bf16.mxu0 %v1138_v0 }
  0x7c   :  { %877 = vmatpush3.bf16.msra.mxu0 %v955_v25 }
  0x7d   :  { %878 = vmatprep.subr.bf16.mxu0 %v1138_v0 }
  0x80   :  { %879 = vmatpush3.bf16.msra.mxu0 %v959_v28 }
  0x81   :  { %880 = vmatprep.subr.bf16.mxu0 %v1138_v0 }
  0x84   :  { %881 = vmatpush3.bf16.msra.mxu0 %v963_v32 }
  0x85   :  { %882 = vmatprep.subr.bf16.mxu0 %v1138_v0 }
  0x88   :  { %883 = vmatpush3.bf16.msra.mxu0 %v967_v35 }
  0x89   :  { %888 = vmatprep.subr.bf16.mxu0 %v1138_v0 }
 0x13e   :  { %v258_v38 = vpop.f32.mrb[0].mxu0 }
 0x13f   :  { %v259_v39 = vadd.f32 %v761_v37, %v258_v38  ;;  %v866_v40 = vpop.f32.mrb[1].mxu0 }
 0x140   :  { %v261_v41 = vpop.f32.mrb[2].mxu0  ;;  %v282_v40 = vsub.s32 2, %v273_v16 }
 0x141   :  { %v265_v42 = vmin.f32 %v259_v39, 0.0  ;;  %v867_v43 = vpop.f32.mrb[3].mxu0  ;;  %vm264_vm1 = vcmp.gt.f32.partialorder %v259_v39, 0.0 }
 0x142   :  { %v509_v41 = vrot.slane %v168_v18, %v282_v40 }
 0x143   :  { %v266_v44 = vmul.f32 1.442695, %v265_v42 }
 0x145   :  { %1000 = vpow2.f32 %v266_v44 }
 0x14f   :  { %v1001_v45 = vpop.eup %1000 }
 0x150   :  { %v770_v46 = vadd.f32 -1.0, %v1001_v45 }
 0x152   :  { %v269_v48 = vsel %vm264_vm1, %v259_v39, %v770_v46 }
 0x153   :  { %v270_v50 = vpack.c.bf16 %v269_v48, %v269_v48 }
 0x155   :  { %448 = vmatmul.mubr.bf16.vlgmr.msra.gmra.mrb[0].mxu1 %v270_v50  ;;  %885 = vmatmul.mubr.bf16.vlgmr.msra.gmra.mrb[4].mxu0 %v270_v50 }
 0x156   :  { %642 = vmatpush1.bf16.msra.mxu1 %v968_v47  ;;  %889 = vmatpush3.bf16.msra.mxu0 %v989_v49 }
 0x157   :  { %643 = vmatprep.subr.bf16.mxu1 %v973_v51  ;;  %890 = vmatprep.subr.bf16.mxu0 %v1138_v0 }
 0x158   :  { %673 = vmatprep.mubr.bf16.mxu1 %v1140_v31  ;;  %904 = vmatprep.mubr.msk.bf16.mxu0 %vm1139_vm0, %v1138_v0 }
 0x15a   :  { %644 = vmatpush1.bf16.msra.mxu1 %v971_v52  ;;  %891 = vmatpush3.bf16.msra.mxu0 %v993_v53 }
 0x15b   :  { %645 = vmatprep.subr.bf16.mxu1 %v976_v54  ;;  %892 = vmatprep.subr.bf16.mxu0 %v1138_v0 }
 0x15e   :  { %646 = vmatpush1.bf16.msra.mxu1 %v974_v55  ;;  %893 = vmatpush3.bf16.msra.mxu0 %v994_v56 }
 0x15f   :  { %647 = vmatprep.subr.bf16.mxu1 %v979_v57  ;;  %894 = vmatprep.subr.bf16.mxu0 %v1138_v0 }
 0x162   :  { %648 = vmatpush1.bf16.msra.mxu1 %v977_v58  ;;  %895 = vmatpush3.bf16.msra.mxu0 %v995_v59 }
 0x163   :  { %649 = vmatprep.subr.bf16.mxu1 %v982_v60  ;;  %896 = vmatprep.subr.bf16.mxu0 %v1138_v0 }
 0x166   :  { %650 = vmatpush1.bf16.msra.mxu1 %v980_v61  ;;  %897 = vmatpush3.bf16.msra.mxu0 %v996_v62 }
 0x167   :  { %651 = vmatprep.subr.bf16.mxu1 %v985_v63  ;;  %898 = vmatprep.subr.bf16.mxu0 %v1138_v0 }
 0x16a   :  { %652 = vmatpush1.bf16.msra.mxu1 %v983_v1  ;;  %899 = vmatpush3.bf16.msra.mxu0 %v997_v2 }
 0x16b   :  { %653 = vmatprep.subr.bf16.mxu1 %v988_v3  ;;  %900 = vmatprep.subr.bf16.mxu0 %v1138_v0 }
 0x16e   :  { %654 = vmatpush1.bf16.msra.mxu1 %v986_v4  ;;  %901 = vmatpush3.bf16.msra.mxu0 %v998_v5 }
 0x16f   :  { %655 = vmatprep.subr.bf16.mxu1 %v992_v6  ;;  %902 = vmatprep.subr.bf16.mxu0 %v1138_v0  ;;  %v167_v0 = vld [vmem:[%s1295_s6] sm:$0x7]  ;;  %s1141_s6 = smov [#allocation10]  }
 0x170   :  { %v275_v20 = vrot.slane %v167_v0, %v274_v17  ;;  %v279_v22 = vrot.slane %v167_v0, %v278_v19  ;;  %v283_v43 = vrot.slane %v167_v0, %v282_v40  ;;  %s750_s7 = sshll.u32 %s1141_s6, 4  ;;  %s751_s7 = int_to_ptr.vmem [resolvable:$true] %s750_s7 }
 0x171   :  { %s1100_s14 = scalar_lea.vmem %s751_s7, 128  ;;  %p1105_p5 = scmp.lt.s32.totalorder %s751_s7, %s751_s7 }
 0x172   :  { %656 = vmatpush1.bf16.msra.mxu1 %v990_v7  ;;  %903 = vmatpush3.bf16.msra.mxu0 %v999_v9  ;;  %v908_v24 = vadd.f32 %v501_v21, %v275_v20  ;;  %v910_v26 = vadd.f32 %v505_v23, %v279_v22  ;;  %p1101_p4 = scmp.ne.s32.totalorder %s751_s7, %s1100_s14  ;;  %p1106_p6 = scmp.lt.s32.totalorder %s1100_s14, %s1100_s14 }
 0x174   :  { %p1107_p7 = por %p1106_p6, %p1105_p5 }
 0x175   :  { %674 = vmatmul.mubr.bf16.vlgmr.msra.gmra.mrb[0].mxu1 %v496_v10  ;;  %905 = vmatmul.mubr.bf16.vlgmr.msra.gmra.mrb[8].mxu0 %v496_v10 }
 0x176   :  { %p1108_p8 = pnand %p1107_p7, %p1101_p4 }
 0x228   :  { %v490_v11 = vpop.f32.mrb[4].mxu0 }
 0x229   :  { %v886_v12 = vpop.f32.mrb[5].mxu0  ;;  %v491_v47 = vadd.f32 %v490_v11, %v283_v43 }
 0x22a   :  { %v493_v13 = vpop.f32.mrb[6].mxu0 }
 0x22b   :  { %v887_v14 = vpop.f32.mrb[7].mxu0 }
 0x248   :  { %v675_v25 = vpop.f32.mrb[0].mxu1  ;;  %v716_v27 = vpop.f32.mrb[8].mxu0 }
 0x249   :  { %v909_v28 = vadd.f32 %v908_v24, %v675_v25  ;;  %v677_v29 = vpop.f32.mrb[1].mxu1  ;;  %v906_v30 = vpop.f32.mrb[9].mxu0  ;;  %v717_v45 = vadd.f32 %v716_v27, %v509_v41 }
 0x24a   :  { %v679_v31 = vpop.f32.mrb[2].mxu1  ;;  %v719_v32 = vpop.f32.mrb[10].mxu0  ;;  %v911_v36 = vadd.f32 %v910_v26, %v677_v29 }
 0x24b   :  { %v819_v33 = vmul.f32 -1.442695, %v909_v28  ;;  %v680_v34 = vpop.f32.mrb[3].mxu1  ;;  %v907_v35 = vpop.f32.mrb[11].mxu0 }
 0x24c   :  { %v820_v37 = vmul.f32 -1.442695, %v911_v36 }
 0x24d   :  { %1002 = vpow2.f32 %v819_v33 }
 0x24e   :  { %1004 = vpow2.f32 %v820_v37 }
 0x257   :  { %v1003_v38 = vpop.eup %1002 }
 0x258   :  { %v726_v39 = vadd.f32 1.0, %v1003_v38  ;;  %v1005_v42 = vpop.eup %1004 }
 0x259   :  { %v733_v44 = vadd.f32 1.0, %v1005_v42 }
 0x25a   :  { %1006 = vrcp.f32 %v726_v39 }
 0x25b   :  { %1008 = vrcp.f32 %v733_v44 }
 0x264   :  { %v1007_v46 = vpop.eup %1006 }
 0x265   :  { %v736_v48 = vmul.f32 %v1007_v46, %v717_v45  ;;  %v1009_v50 = vpop.eup %1008 }
 0x266   :  { %v739_v51 = vsub.f32 1.0, %v1009_v50  ;;  %v741_v54 = vmul.f32 %v1009_v50, %v84_v8 }
 0x267   :  { %v737_v49 = vadd.f32 %v736_v48, %v491_v47 }
 0x269   :  { %1010 = vtanh.f32 %v737_v49 }
 0x273   :  { %v1011_v52 = vpop.eup %1010 }
 0x274   :  { %v740_v53 = vmul.f32 %v1011_v52, %v739_v51 }
 0x276   :  { %v742_v55 = vadd.f32 %v741_v54, %v740_v53 }
 0x278   :  { %743 = vst [vmem:[#allocation10] sm:$0xff] %v742_v55 }
 0x279   :  { %1111 = shalt.err (!%p1108_p8)
}
 0x27a   :  { %s1112_s17 = scalar_lea.hbm %s1297_s8, 128 }
 0x27b   :  { %p1113_p9 = scmp.ne.s32.totalorder %s1297_s8, %s1112_s17  ;;  %p1116_p10 = scmp.lt.u32.totalorder %s1112_s17, %s1297_s8 }
 0x27d   :  { %p1118_p11 = pnand %p1116_p10, %p1113_p9 }
 0x27f   :  { %1121 = shalt.err (!%p1118_p11)
}
 0x280   :  { %753 = dma.vmem_to_hbm [thread:$0]  %s751_s7, 128, %s1297_s8, [#allocation4]  }
 0x281   :  { %1128 = dma.done.wait [#allocation4], 128  }
 0x282   :  { %1129 = vsyncadd [#allocation4], 4294967168 }
 0x283   :  { %757 = vsyncpa [#allocation3], 1 }
 0x284   :  { %758 = vsyncpa [#allocation6], 1 }
 0x285   :  { %759 = vsyncpa [#allocation9], 1 }
 0x286   :  { %760 = vsyncpa [#allocation4], 1 }

</bundles_post_ra>
